<compile_context>
chip_gen: v7x
topology: tpu7x:2x2x1
jax: 0.10.0
libtpu: 0.0.40
codegen_flags: <defaults>
</compile_context>

<pallas_src>
import functools

import jax
import jax.numpy as jnp
from jax.experimental import pallas as pl
from jax.experimental.pallas import tpu as pltpu


def _round_up(x: int, m: int) -> int:
    return ((x + m - 1) // m) * m


# -----------------------------------------------------------------------------
# Fused kernel: full TransReprModule forward + target normalization.
# -----------------------------------------------------------------------------
def _lbs_fused_kernel(
        # batch-tiled activations
        obs_ref, act_ref, nobs_ref,
        # parameters (block index constant across grid -> stay resident)
        w1a_ref, w1b_ref, b1_ref,
        w2_ref, b2_ref,
        wt_ref, bt_ref,
        w3a_ref, w3b_ref, b3_ref,
        w4_ref, b4_ref,
        wr_ref, br_ref,
        fmean_ref, fstd_ref,
        # outputs
        target_ref, tmu_ref, tsig_ref, rmu_ref, rsig_ref,
        *, state_size, reparam_noise):
    f32 = jnp.float32
    obs = obs_ref[...]
    act = act_ref[...]
    nobs = nobs_ref[...]

    # target_model = nn.Identity() (1-D obs path) + feature normalization.
    target_ref[...] = ((nobs - fmean_ref[...]) / fstd_ref[...]).astype(
        target_ref.dtype)

    # trans_det: Linear(O+A, H) -> ReLU -> Linear(H, H) -> ReLU.
    # torch.cat([obs, act]) is folded into two matmuls against the pre-split
    # halves of W1 (split once at parameter-prep time, not per call).
    h = (jnp.dot(obs, w1a_ref[...], preferred_element_type=f32)
         + jnp.dot(act, w1b_ref[...], preferred_element_type=f32)
         + b1_ref[...])
    h = jnp.maximum(h, 0.0)
    h = jnp.dot(h, w2_ref[...], preferred_element_type=f32) + b2_ref[...]
    h = jnp.maximum(h, 0.0)                    # trans_det_states (stays on-chip)

    # trans_stoc: VariationalLinear, mu|sigma heads fused into one MXU call.
    yt = jnp.dot(h, wt_ref[...], preferred_element_type=f32) + bt_ref[...]
    tmu_ref[...] = yt[:, :state_size].astype(tmu_ref.dtype)
    tsig_ref[...] = (jax.nn.softplus(yt[:, state_size:])
                     + reparam_noise).astype(tsig_ref.dtype)

    # repr_model: Linear(H+O, H) -> ReLU -> Linear(H, H) -> ReLU -> VarLinear.
    # torch.cat([trans_det_states, next_obs]) folded into two matmuls.
    r = (jnp.dot(h, w3a_ref[...], preferred_element_type=f32)
         + jnp.dot(nobs, w3b_ref[...], preferred_element_type=f32)
         + b3_ref[...])
    r = jnp.maximum(r, 0.0)
    r = jnp.dot(r, w4_ref[...], preferred_element_type=f32) + b4_ref[...]
    r = jnp.maximum(r, 0.0)

    yr = jnp.dot(r, wr_ref[...], preferred_element_type=f32) + br_ref[...]
    rmu_ref[...] = yr[:, :state_size].astype(rmu_ref.dtype)
    rsig_ref[...] = (jax.nn.softplus(yr[:, state_size:])
                     + reparam_noise).astype(rsig_ref.dtype)


# -----------------------------------------------------------------------------
# Wrapper
# -----------------------------------------------------------------------------
def lbs_forward(obs, act, next_obs, params, *, reparam_noise=1e-4,
                block_b=4096):
    """LBS.forward for the 1-D obs case.

    Returns (target_next_states, (trans_mu, trans_sigma), (repr_mu, repr_sigma)).
    `params` must come from `prepare_lbs_params` (one-time fused layout).
    """
    B, O = obs.shape
    A = act.shape[1]
    H = params["w2"].shape[0]
    S = params["wt"].shape[1] // 2

    # Minimal grid: per-step overhead dominates at these layer sizes.  VMEM is
    # a non-issue (everything here is a few hundred KiB).  On v7x, pass
    # block_b ~= ceil(B/2) so the "parallel" batch axis splits over both TCs.
    if B <= block_b:
        blk, grid_b = B, 1          # block == full dim -> no (8,128) constraint
    else:
        blk = _round_up(min(block_b, B), 8)
        grid_b = pl.cdiv(B, blk)    # ragged last tile handled by edge masking

    def row_spec(width):
        return pl.BlockSpec((blk, width), lambda i: (i, 0))

    def param_spec(p):
        return pl.BlockSpec(p.shape, lambda i: (0, 0))

    ordered_params = (params["w1a"], params["w1b"], params["b1"],
                      params["w2"], params["b2"],
                      params["wt"], params["bt"],
                      params["w3a"], params["w3b"], params["b3"],
                      params["w4"], params["b4"],
                      params["wr"], params["br"],
                      params["feat_mean"], params["feat_std"])

    in_specs = ([row_spec(O), row_spec(A), row_spec(O)]
                + [param_spec(p) for p in ordered_params])
    out_specs = tuple(row_spec(S) for _ in range(5))
    out_shape = tuple(jax.ShapeDtypeStruct((B, S), obs.dtype) for _ in range(5))

    flops_per_row = 2 * ((O + A) * H + H * H + H * 2 * S
                         + (H + O) * H + H * H + H * 2 * S)
    param_elems = sum(int(p.size) for p in ordered_params)
    cost = pl.CostEstimate(
        flops=B * flops_per_row,
        transcendentals=4 * B * S,                 # 2 softplus heads ~ exp+log
        bytes_accessed=4 * (B * (2 * O + A + 5 * S) + param_elems),
    )

    kernel = functools.partial(_lbs_fused_kernel,
                               state_size=S,
                               reparam_noise=float(reparam_noise))

    target, tmu, tsig, rmu, rsig = pl.pallas_call(
        kernel,
        out_shape=out_shape,
        grid_spec=pl.GridSpec(grid=(grid_b,),
                              in_specs=in_specs,
                              out_specs=out_specs),
        compiler_params=pltpu.CompilerParams(
            dimension_semantics=("parallel",)),
        cost_estimate=cost,
    )(obs, act, next_obs, *ordered_params)

    return target, (tmu, tsig), (rmu, rsig)


# -----------------------------------------------------------------------------
# Parameter init (mimics nn.Linear default) + one-time fused-layout prep
# -----------------------------------------------------------------------------
def _init_linear(key, fan_in, fan_out):
    k_w, k_b = jax.random.split(key)
    bound = 1.0 / (float(fan_in) ** 0.5)
    # stored transposed (in, out) so kernels compute x @ W
    w = jax.random.uniform(k_w, (fan_in, fan_out), jnp.float32, -bound, bound)
    b = jax.random.uniform(k_b, (fan_out,), jnp.float32, -bound, bound)
    return w, b


def init_lbs_params(key, obs_size, act_size, state_size, hidden_size):
    ks = jax.random.split(key, 8)
    raw = {}
    raw["w1"], raw["b1"] = _init_linear(ks[0], obs_size + act_size, hidden_size)
    raw["w2"], raw["b2"] = _init_linear(ks[1], hidden_size, hidden_size)
    raw["wt_mu"], raw["bt_mu"] = _init_linear(ks[2], hidden_size, state_size)
    raw["wt_sig"], raw["bt_sig"] = _init_linear(ks[3], hidden_size, state_size)
    raw["w3"], raw["b3"] = _init_linear(ks[4], hidden_size + obs_size, hidden_size)
    raw["w4"], raw["b4"] = _init_linear(ks[5], hidden_size, hidden_size)
    raw["wr_mu"], raw["br_mu"] = _init_linear(ks[6], hidden_size, state_size)
    raw["wr_sig"], raw["br_sig"] = _init_linear(ks[7], hidden_size, state_size)
    raw["feat_mean"] = jnp.zeros((state_size,), jnp.float32)
    raw["feat_std"] = jnp.ones((state_size,), jnp.float32)
    return raw


def prepare_lbs_params(raw, obs_size, act_size, hidden_size):
    """One-time layout prep (split concat-input weights, fuse mu|sigma heads)."""
    O, H = obs_size, hidden_size
    p = {}
    p["w1a"] = raw["w1"][:O]                 # obs half of Linear(O+A, H)
    p["w1b"] = raw["w1"][O:]                 # act half
    p["b1"] = raw["b1"].reshape(1, -1)
    p["w2"] = raw["w2"]
    p["b2"] = raw["b2"].reshape(1, -1)
    p["wt"] = jnp.concatenate([raw["wt_mu"], raw["wt_sig"]], axis=1)
    p["bt"] = jnp.concatenate([raw["bt_mu"], raw["bt_sig"]]).reshape(1, -1)
    p["w3a"] = raw["w3"][:H]                 # trans_det_states half of Linear(H+O, H)
    p["w3b"] = raw["w3"][H:]                 # next_obs half
    p["b3"] = raw["b3"].reshape(1, -1)
    p["w4"] = raw["w4"]
    p["b4"] = raw["b4"].reshape(1, -1)
    p["wr"] = jnp.concatenate([raw["wr_mu"], raw["wr_sig"]], axis=1)
    p["br"] = jnp.concatenate([raw["br_mu"], raw["br_sig"]]).reshape(1, -1)
    p["feat_mean"] = raw["feat_mean"].reshape(1, -1)
    p["feat_std"] = raw["feat_std"].reshape(1, -1)
    return {k: jnp.asarray(v, jnp.float32) for k, v in p.items()}


# -----------------------------------------------------------------------------
# Pure-JAX reference
# -----------------------------------------------------------------------------
def lbs_forward_reference(obs, act, next_obs, raw, reparam_noise=1e-4):
    target = (next_obs - raw["feat_mean"]) / raw["feat_std"]
    h = jax.nn.relu(jnp.concatenate([obs, act], 1) @ raw["w1"] + raw["b1"])
    h = jax.nn.relu(h @ raw["w2"] + raw["b2"])
    tmu = h @ raw["wt_mu"] + raw["bt_mu"]
    tsig = jax.nn.softplus(h @ raw["wt_sig"] + raw["bt_sig"]) + reparam_noise
    r = jax.nn.relu(jnp.concatenate([h, next_obs], 1) @ raw["w3"] + raw["b3"])
    r = jax.nn.relu(r @ raw["w4"] + raw["b4"])
    rmu = r @ raw["wr_mu"] + raw["br_mu"]
    rsig = jax.nn.softplus(r @ raw["wr_sig"] + raw["br_sig"]) + reparam_noise
    return target, tmu, tsig, rmu, rsig


if __name__ == "__main__":
    obs_size, act_size, hidden_size = 16, 4, 32
    state_size = obs_size          # 1-D obs path: state_size = obs_size
    reparam_noise = 1e-4

    key = jax.random.PRNGKey(0)
    k_param, k_data = jax.random.split(key)
    raw = init_lbs_params(k_param, obs_size, act_size, state_size, hidden_size)
    params = prepare_lbs_params(raw, obs_size, act_size, hidden_size)

    # --- case 1: small batch, single tile ------------------------------------
    B = 8
    k1, k2, k3, k4, k5, k6 = jax.random.split(k_data, 6)
    obs = jax.random.normal(k1, (B, obs_size), jnp.float32)
    act = jax.random.normal(k2, (B, act_size), jnp.float32)
    nobs = jax.random.normal(k3, (B, obs_size), jnp.float32)

    target, (tmu, tsig), (rmu, rsig) = lbs_forward(
        obs, act, nobs, params, reparam_noise=reparam_noise)
    jax.block_until_ready((target, tmu, tsig, rmu, rsig))

    refs = lbs_forward_reference(obs, act, nobs, raw, reparam_noise)
    for got, want in zip((target, tmu, tsig, rmu, rsig), refs):
        assert got.shape == (B, state_size)
        assert jnp.allclose(got, want, atol=1e-4, rtol=1e-4)
    assert bool(jnp.all(tsig > 0.0)) and bool(jnp.all(rsig > 0.0))

    # --- case 2: ragged batch, multi-step grid (edge-block handling) ---------
    B2 = 50
    obs2 = jax.random.normal(k4, (B2, obs_size), jnp.float32)
    act2 = jax.random.normal(k5, (B2, act_size), jnp.float32)
    nobs2 = jax.random.normal(k6, (B2, obs_size), jnp.float32)

    target2, (tmu2, tsig2), (rmu2, rsig2) = lbs_forward(
        obs2, act2, nobs2, params, reparam_noise=reparam_noise, block_b=16)
    jax.block_until_ready((target2, tmu2, tsig2, rmu2, rsig2))

    refs2 = lbs_forward_reference(obs2, act2, nobs2, raw, reparam_noise)
    for got, want in zip((target2, tmu2, tsig2, rmu2, rsig2), refs2):
        assert got.shape == (B2, state_size)
        assert jnp.allclose(got, want, atol=1e-4, rtol=1e-4)
    assert bool(jnp.all(tsig2 > 0.0)) and bool(jnp.all(rsig2 > 0.0))

    print("KERNEL_OK")
</pallas_src>

<mosaic_0001>
module attributes {stable_mosaic.version = 11 : i64} {
  func.func @_lbs_fused_kernel(%arg0: i32, %arg1: memref<8x16xf32, #tpu.memory_space<vmem>>, %arg2: memref<8x4xf32, #tpu.memory_space<vmem>>, %arg3: memref<8x16xf32, #tpu.memory_space<vmem>>, %arg4: memref<16x32xf32, #tpu.memory_space<vmem>>, %arg5: memref<4x32xf32, #tpu.memory_space<vmem>>, %arg6: memref<1x32xf32, #tpu.memory_space<vmem>>, %arg7: memref<32x32xf32, #tpu.memory_space<vmem>>, %arg8: memref<1x32xf32, #tpu.memory_space<vmem>>, %arg9: memref<32x32xf32, #tpu.memory_space<vmem>>, %arg10: memref<1x32xf32, #tpu.memory_space<vmem>>, %arg11: memref<32x32xf32, #tpu.memory_space<vmem>>, %arg12: memref<16x32xf32, #tpu.memory_space<vmem>>, %arg13: memref<1x32xf32, #tpu.memory_space<vmem>>, %arg14: memref<32x32xf32, #tpu.memory_space<vmem>>, %arg15: memref<1x32xf32, #tpu.memory_space<vmem>>, %arg16: memref<32x32xf32, #tpu.memory_space<vmem>>, %arg17: memref<1x32xf32, #tpu.memory_space<vmem>>, %arg18: memref<1x16xf32, #tpu.memory_space<vmem>>, %arg19: memref<1x16xf32, #tpu.memory_space<vmem>>, %arg20: memref<8x16xf32, #tpu.memory_space<vmem>>, %arg21: memref<8x16xf32, #tpu.memory_space<vmem>>, %arg22: memref<8x16xf32, #tpu.memory_space<vmem>>, %arg23: memref<8x16xf32, #tpu.memory_space<vmem>>, %arg24: memref<8x16xf32, #tpu.memory_space<vmem>>) attributes {dimension_semantics = [#tpu.dimension_semantics<parallel>], iteration_bounds = array<i64: 1>, scalar_prefetch = 0 : i64, scratch_operands = 0 : i64, tpu.core_type = #tpu.core_type<tc>, window_params = [{transform_indices = @transform_0, window_bounds = array<i64: 8, 16>}, {transform_indices = @transform_1, window_bounds = array<i64: 8, 4>}, {transform_indices = @transform_2, window_bounds = array<i64: 8, 16>}, {pipeline_mode = #tpu.pipeline_mode<synchronous>, transform_indices = @transform_3, window_bounds = array<i64: 16, 32>}, {pipeline_mode = #tpu.pipeline_mode<synchronous>, transform_indices = @transform_4, window_bounds = array<i64: 4, 32>}, {pipeline_mode = #tpu.pipeline_mode<synchronous>, transform_indices = @transform_5, window_bounds = array<i64: 1, 32>}, {pipeline_mode = #tpu.pipeline_mode<synchronous>, transform_indices = @transform_6, window_bounds = array<i64: 32, 32>}, {pipeline_mode = #tpu.pipeline_mode<synchronous>, transform_indices = @transform_7, window_bounds = array<i64: 1, 32>}, {pipeline_mode = #tpu.pipeline_mode<synchronous>, transform_indices = @transform_8, window_bounds = array<i64: 32, 32>}, {pipeline_mode = #tpu.pipeline_mode<synchronous>, transform_indices = @transform_9, window_bounds = array<i64: 1, 32>}, {pipeline_mode = #tpu.pipeline_mode<synchronous>, transform_indices = @transform_10, window_bounds = array<i64: 32, 32>}, {pipeline_mode = #tpu.pipeline_mode<synchronous>, transform_indices = @transform_11, window_bounds = array<i64: 16, 32>}, {pipeline_mode = #tpu.pipeline_mode<synchronous>, transform_indices = @transform_12, window_bounds = array<i64: 1, 32>}, {pipeline_mode = #tpu.pipeline_mode<synchronous>, transform_indices = @transform_13, window_bounds = array<i64: 32, 32>}, {pipeline_mode = #tpu.pipeline_mode<synchronous>, transform_indices = @transform_14, window_bounds = array<i64: 1, 32>}, {pipeline_mode = #tpu.pipeline_mode<synchronous>, transform_indices = @transform_15, window_bounds = array<i64: 32, 32>}, {pipeline_mode = #tpu.pipeline_mode<synchronous>, transform_indices = @transform_16, window_bounds = array<i64: 1, 32>}, {pipeline_mode = #tpu.pipeline_mode<synchronous>, transform_indices = @transform_17, window_bounds = array<i64: 1, 16>}, {pipeline_mode = #tpu.pipeline_mode<synchronous>, transform_indices = @transform_18, window_bounds = array<i64: 1, 16>}, {transform_indices = @transform_19, window_bounds = array<i64: 8, 16>}, {transform_indices = @transform_20, window_bounds = array<i64: 8, 16>}, {transform_indices = @transform_21, window_bounds = array<i64: 8, 16>}, {transform_indices = @transform_22, window_bounds = array<i64: 8, 16>}, {transform_indices = @transform_23, window_bounds = array<i64: 8, 16>}]} {
    %c0 = arith.constant 0 : index
    %c0_0 = arith.constant 0 : index
    %0 = vector.load %arg1[%c0, %c0_0] : memref<8x16xf32, #tpu.memory_space<vmem>>, vector<8x16xf32>
    %c0_1 = arith.constant 0 : index
    %c0_2 = arith.constant 0 : index
    %1 = vector.load %arg2[%c0_1, %c0_2] : memref<8x4xf32, #tpu.memory_space<vmem>>, vector<8x4xf32>
    %c0_3 = arith.constant 0 : index
    %c0_4 = arith.constant 0 : index
    %2 = vector.load %arg3[%c0_3, %c0_4] : memref<8x16xf32, #tpu.memory_space<vmem>>, vector<8x16xf32>
    %c0_5 = arith.constant 0 : index
    %c0_6 = arith.constant 0 : index
    %3 = vector.load %arg18[%c0_5, %c0_6] : memref<1x16xf32, #tpu.memory_space<vmem>>, vector<1x16xf32>
    %4 = vector.broadcast %3 : vector<1x16xf32> to vector<8x16xf32>
    %5 = arith.subf %2, %4 : vector<8x16xf32>
    %c0_7 = arith.constant 0 : index
    %c0_8 = arith.constant 0 : index
    %6 = vector.load %arg19[%c0_7, %c0_8] : memref<1x16xf32, #tpu.memory_space<vmem>>, vector<1x16xf32>
    %7 = vector.broadcast %6 : vector<1x16xf32> to vector<8x16xf32>
    %8 = arith.divf %5, %7 : vector<8x16xf32>
    %c0_9 = arith.constant 0 : index
    %c0_10 = arith.constant 0 : index
    %9 = vector.load %arg20[%c0_9, %c0_10] : memref<8x16xf32, #tpu.memory_space<vmem>>, vector<8x16xf32>
    tpu.vector_store %arg20[%c0_9, %c0_10], %8 {strides = array<i32>} : memref<8x16xf32, #tpu.memory_space<vmem>>, vector<8x16xf32>,
    %c0_11 = arith.constant 0 : index
    %c0_12 = arith.constant 0 : index
    %10 = vector.load %arg4[%c0_11, %c0_12] : memref<16x32xf32, #tpu.memory_space<vmem>>, vector<16x32xf32>
    %cst = arith.constant dense<0.000000e+00> : vector<8x32xf32>
    %11 = tpu.matmul %0, %10, %cst {dimension_numbers = #tpu.dot_dimension_numbers<[1], [0], [0], [1], [0, 0, 1, 1], [], []>} : vector<8x16xf32>, vector<16x32xf32>, vector<8x32xf32> -> vector<8x32xf32>
    %c0_13 = arith.constant 0 : index
    %c0_14 = arith.constant 0 : index
    %12 = vector.load %arg5[%c0_13, %c0_14] : memref<4x32xf32, #tpu.memory_space<vmem>>, vector<4x32xf32>
    %cst_15 = arith.constant dense<0.000000e+00> : vector<8x32xf32>
    %13 = tpu.matmul %1, %12, %cst_15 {dimension_numbers = #tpu.dot_dimension_numbers<[1], [0], [0], [1], [0, 0, 1, 1], [], []>} : vector<8x4xf32>, vector<4x32xf32>, vector<8x32xf32> -> vector<8x32xf32>
    %14 = arith.addf %11, %13 : vector<8x32xf32>
    %c0_16 = arith.constant 0 : index
    %c0_17 = arith.constant 0 : index
    %15 = vector.load %arg6[%c0_16, %c0_17] : memref<1x32xf32, #tpu.memory_space<vmem>>, vector<1x32xf32>
    %16 = vector.broadcast %15 : vector<1x32xf32> to vector<8x32xf32>
    %17 = arith.addf %14, %16 : vector<8x32xf32>
    %cst_18 = arith.constant 0.000000e+00 : f32
    %18 = vector.broadcast %cst_18 : f32 to vector<8x32xf32>
    %19 = arith.maximumf %17, %18 : vector<8x32xf32>
    %c0_19 = arith.constant 0 : index
    %c0_20 = arith.constant 0 : index
    %20 = vector.load %arg7[%c0_19, %c0_20] : memref<32x32xf32, #tpu.memory_space<vmem>>, vector<32x32xf32>
    %cst_21 = arith.constant dense<0.000000e+00> : vector<8x32xf32>
    %21 = tpu.matmul %19, %20, %cst_21 {dimension_numbers = #tpu.dot_dimension_numbers<[1], [0], [0], [1], [0, 0, 1, 1], [], []>} : vector<8x32xf32>, vector<32x32xf32>, vector<8x32xf32> -> vector<8x32xf32>
    %c0_22 = arith.constant 0 : index
    %c0_23 = arith.constant 0 : index
    %22 = vector.load %arg8[%c0_22, %c0_23] : memref<1x32xf32, #tpu.memory_space<vmem>>, vector<1x32xf32>
    %23 = vector.broadcast %22 : vector<1x32xf32> to vector<8x32xf32>
    %24 = arith.addf %21, %23 : vector<8x32xf32>
    %cst_24 = arith.constant 0.000000e+00 : f32
    %25 = vector.broadcast %cst_24 : f32 to vector<8x32xf32>
    %26 = arith.maximumf %24, %25 : vector<8x32xf32>
    %c0_25 = arith.constant 0 : index
    %c0_26 = arith.constant 0 : index
    %27 = vector.load %arg9[%c0_25, %c0_26] : memref<32x32xf32, #tpu.memory_space<vmem>>, vector<32x32xf32>
    %cst_27 = arith.constant dense<0.000000e+00> : vector<8x32xf32>
    %28 = tpu.matmul %26, %27, %cst_27 {dimension_numbers = #tpu.dot_dimension_numbers<[1], [0], [0], [1], [0, 0, 1, 1], [], []>} : vector<8x32xf32>, vector<32x32xf32>, vector<8x32xf32> -> vector<8x32xf32>
    %c0_28 = arith.constant 0 : index
    %c0_29 = arith.constant 0 : index
    %29 = vector.load %arg10[%c0_28, %c0_29] : memref<1x32xf32, #tpu.memory_space<vmem>>, vector<1x32xf32>
    %30 = vector.broadcast %29 : vector<1x32xf32> to vector<8x32xf32>
    %31 = arith.addf %28, %30 : vector<8x32xf32>
    %32 = vector.extract_strided_slice %31 {offsets = [0, 0], sizes = [8, 16], strides = [1, 1]} : vector<8x32xf32> to vector<8x16xf32>
    %c0_30 = arith.constant 0 : index
    %c0_31 = arith.constant 0 : index
    %33 = vector.load %arg21[%c0_30, %c0_31] : memref<8x16xf32, #tpu.memory_space<vmem>>, vector<8x16xf32>
    tpu.vector_store %arg21[%c0_30, %c0_31], %32 {strides = array<i32>} : memref<8x16xf32, #tpu.memory_space<vmem>>, vector<8x16xf32>,
    %34 = vector.extract_strided_slice %31 {offsets = [0, 16], sizes = [8, 16], strides = [1, 1]} : vector<8x32xf32> to vector<8x16xf32>
    %cst_32 = arith.constant 0.000000e+00 : f32
    %35 = vector.broadcast %cst_32 : f32 to vector<8x16xf32>
    %36 = arith.maximumf %34, %35 : vector<8x16xf32>
    %37 = vector.broadcast %cst_32 : f32 to vector<8x16xf32>
    %38 = arith.subf %34, %37 : vector<8x16xf32>
    %39 = arith.cmpf one, %38, %38 : vector<8x16xf32>
    %40 = vector.broadcast %cst_32 : f32 to vector<8x16xf32>
    %41 = arith.addf %34, %40 : vector<8x16xf32>
    %42 = math.absf %38 : vector<8x16xf32>
    %cst_33 = arith.constant 0.000000e+00 : f32
    %43 = vector.broadcast %cst_33 : f32 to vector<8x16xf32>
    %44 = arith.subf %43, %42 : vector<8x16xf32>
    %45 = math.exp %44 : vector<8x16xf32>
    %46 = math.log1p %45 : vector<8x16xf32>
    %47 = arith.addf %36, %46 : vector<8x16xf32>
    %48 = arith.select %39, %41, %47 : vector<8x16xi1>, vector<8x16xf32>
    %cst_34 = arith.constant 9.99999974E-5 : f32
    %49 = vector.broadcast %cst_34 : f32 to vector<8x16xf32>
    %50 = arith.addf %48, %49 : vector<8x16xf32>
    %c0_35 = arith.constant 0 : index
    %c0_36 = arith.constant 0 : index
    %51 = vector.load %arg22[%c0_35, %c0_36] : memref<8x16xf32, #tpu.memory_space<vmem>>, vector<8x16xf32>
    tpu.vector_store %arg22[%c0_35, %c0_36], %50 {strides = array<i32>} : memref<8x16xf32, #tpu.memory_space<vmem>>, vector<8x16xf32>,
    %c0_37 = arith.constant 0 : index
    %c0_38 = arith.constant 0 : index
    %52 = vector.load %arg11[%c0_37, %c0_38] : memref<32x32xf32, #tpu.memory_space<vmem>>, vector<32x32xf32>
    %cst_39 = arith.constant dense<0.000000e+00> : vector<8x32xf32>
    %53 = tpu.matmul %26, %52, %cst_39 {dimension_numbers = #tpu.dot_dimension_numbers<[1], [0], [0], [1], [0, 0, 1, 1], [], []>} : vector<8x32xf32>, vector<32x32xf32>, vector<8x32xf32> -> vector<8x32xf32>
    %c0_40 = arith.constant 0 : index
    %c0_41 = arith.constant 0 : index
    %54 = vector.load %arg12[%c0_40, %c0_41] : memref<16x32xf32, #tpu.memory_space<vmem>>, vector<16x32xf32>
    %cst_42 = arith.constant dense<0.000000e+00> : vector<8x32xf32>
    %55 = tpu.matmul %2, %54, %cst_42 {dimension_numbers = #tpu.dot_dimension_numbers<[1], [0], [0], [1], [0, 0, 1, 1], [], []>} : vector<8x16xf32>, vector<16x32xf32>, vector<8x32xf32> -> vector<8x32xf32>
    %56 = arith.addf %53, %55 : vector<8x32xf32>
    %c0_43 = arith.constant 0 : index
    %c0_44 = arith.constant 0 : index
    %57 = vector.load %arg13[%c0_43, %c0_44] : memref<1x32xf32, #tpu.memory_space<vmem>>, vector<1x32xf32>
    %58 = vector.broadcast %57 : vector<1x32xf32> to vector<8x32xf32>
    %59 = arith.addf %56, %58 : vector<8x32xf32>
    %cst_45 = arith.constant 0.000000e+00 : f32
    %60 = vector.broadcast %cst_45 : f32 to vector<8x32xf32>
    %61 = arith.maximumf %59, %60 : vector<8x32xf32>
    %c0_46 = arith.constant 0 : index
    %c0_47 = arith.constant 0 : index
    %62 = vector.load %arg14[%c0_46, %c0_47] : memref<32x32xf32, #tpu.memory_space<vmem>>, vector<32x32xf32>
    %cst_48 = arith.constant dense<0.000000e+00> : vector<8x32xf32>
    %63 = tpu.matmul %61, %62, %cst_48 {dimension_numbers = #tpu.dot_dimension_numbers<[1], [0], [0], [1], [0, 0, 1, 1], [], []>} : vector<8x32xf32>, vector<32x32xf32>, vector<8x32xf32> -> vector<8x32xf32>
    %c0_49 = arith.constant 0 : index
    %c0_50 = arith.constant 0 : index
    %64 = vector.load %arg15[%c0_49, %c0_50] : memref<1x32xf32, #tpu.memory_space<vmem>>, vector<1x32xf32>
    %65 = vector.broadcast %64 : vector<1x32xf32> to vector<8x32xf32>
    %66 = arith.addf %63, %65 : vector<8x32xf32>
    %cst_51 = arith.constant 0.000000e+00 : f32
    %67 = vector.broadcast %cst_51 : f32 to vector<8x32xf32>
    %68 = arith.maximumf %66, %67 : vector<8x32xf32>
    %c0_52 = arith.constant 0 : index
    %c0_53 = arith.constant 0 : index
    %69 = vector.load %arg16[%c0_52, %c0_53] : memref<32x32xf32, #tpu.memory_space<vmem>>, vector<32x32xf32>
    %cst_54 = arith.constant dense<0.000000e+00> : vector<8x32xf32>
    %70 = tpu.matmul %68, %69, %cst_54 {dimension_numbers = #tpu.dot_dimension_numbers<[1], [0], [0], [1], [0, 0, 1, 1], [], []>} : vector<8x32xf32>, vector<32x32xf32>, vector<8x32xf32> -> vector<8x32xf32>
    %c0_55 = arith.constant 0 : index
    %c0_56 = arith.constant 0 : index
    %71 = vector.load %arg17[%c0_55, %c0_56] : memref<1x32xf32, #tpu.memory_space<vmem>>, vector<1x32xf32>
    %72 = vector.broadcast %71 : vector<1x32xf32> to vector<8x32xf32>
    %73 = arith.addf %70, %72 : vector<8x32xf32>
    %74 = vector.extract_strided_slice %73 {offsets = [0, 0], sizes = [8, 16], strides = [1, 1]} : vector<8x32xf32> to vector<8x16xf32>
    %c0_57 = arith.constant 0 : index
    %c0_58 = arith.constant 0 : index
    %75 = vector.load %arg23[%c0_57, %c0_58] : memref<8x16xf32, #tpu.memory_space<vmem>>, vector<8x16xf32>
    tpu.vector_store %arg23[%c0_57, %c0_58], %74 {strides = array<i32>} : memref<8x16xf32, #tpu.memory_space<vmem>>, vector<8x16xf32>,
    %76 = vector.extract_strided_slice %73 {offsets = [0, 16], sizes = [8, 16], strides = [1, 1]} : vector<8x32xf32> to vector<8x16xf32>
    %cst_59 = arith.constant 0.000000e+00 : f32
    %77 = vector.broadcast %cst_59 : f32 to vector<8x16xf32>
    %78 = arith.maximumf %76, %77 : vector<8x16xf32>
    %79 = vector.broadcast %cst_59 : f32 to vector<8x16xf32>
    %80 = arith.subf %76, %79 : vector<8x16xf32>
    %81 = arith.cmpf one, %80, %80 : vector<8x16xf32>
    %82 = vector.broadcast %cst_59 : f32 to vector<8x16xf32>
    %83 = arith.addf %76, %82 : vector<8x16xf32>
    %84 = math.absf %80 : vector<8x16xf32>
    %cst_60 = arith.constant 0.000000e+00 : f32
    %85 = vector.broadcast %cst_60 : f32 to vector<8x16xf32>
    %86 = arith.subf %85, %84 : vector<8x16xf32>
    %87 = math.exp %86 : vector<8x16xf32>
    %88 = math.log1p %87 : vector<8x16xf32>
    %89 = arith.addf %78, %88 : vector<8x16xf32>
    %90 = arith.select %81, %83, %89 : vector<8x16xi1>, vector<8x16xf32>
    %cst_61 = arith.constant 9.99999974E-5 : f32
    %91 = vector.broadcast %cst_61 : f32 to vector<8x16xf32>
    %92 = arith.addf %90, %91 : vector<8x16xf32>
    %c0_62 = arith.constant 0 : index
    %c0_63 = arith.constant 0 : index
    %93 = vector.load %arg24[%c0_62, %c0_63] : memref<8x16xf32, #tpu.memory_space<vmem>>, vector<8x16xf32>
    tpu.vector_store %arg24[%c0_62, %c0_63], %92 {strides = array<i32>} : memref<8x16xf32, #tpu.memory_space<vmem>>, vector<8x16xf32>,
    return
  }
  func.func @transform_0(%arg0: i32) -> (i32, i32) {
    %c0_i32 = arith.constant 0 : i32
    %c0_i32_0 = arith.constant 0 : i32
    return %arg0, %c0_i32 : i32, i32
  }
  func.func @transform_1(%arg0: i32) -> (i32, i32) {
    %c0_i32 = arith.constant 0 : i32
    %c0_i32_0 = arith.constant 0 : i32
    return %arg0, %c0_i32 : i32, i32
  }
  func.func @transform_2(%arg0: i32) -> (i32, i32) {
    %c0_i32 = arith.constant 0 : i32
    %c0_i32_0 = arith.constant 0 : i32
    return %arg0, %c0_i32 : i32, i32
  }
  func.func @transform_3(%arg0: i32) -> (i32, i32) {
    %c0_i32 = arith.constant 0 : i32
    %c0_i32_0 = arith.constant 0 : i32
    %c0_i32_1 = arith.constant 0 : i32
    return %c0_i32, %c0_i32_0 : i32, i32
  }
  func.func @transform_4(%arg0: i32) -> (i32, i32) {
    %c0_i32 = arith.constant 0 : i32
    %c0_i32_0 = arith.constant 0 : i32
    %c0_i32_1 = arith.constant 0 : i32
    return %c0_i32, %c0_i32_0 : i32, i32
  }
  func.func @transform_5(%arg0: i32) -> (i32, i32) {
    %c0_i32 = arith.constant 0 : i32
    %c0_i32_0 = arith.constant 0 : i32
    %c0_i32_1 = arith.constant 0 : i32
    return %c0_i32, %c0_i32_0 : i32, i32
  }
  func.func @transform_6(%arg0: i32) -> (i32, i32) {
    %c0_i32 = arith.constant 0 : i32
    %c0_i32_0 = arith.constant 0 : i32
    %c0_i32_1 = arith.constant 0 : i32
    return %c0_i32, %c0_i32_0 : i32, i32
  }
  func.func @transform_7(%arg0: i32) -> (i32, i32) {
    %c0_i32 = arith.constant 0 : i32
    %c0_i32_0 = arith.constant 0 : i32
    %c0_i32_1 = arith.constant 0 : i32
    return %c0_i32, %c0_i32_0 : i32, i32
  }
  func.func @transform_8(%arg0: i32) -> (i32, i32) {
    %c0_i32 = arith.constant 0 : i32
    %c0_i32_0 = arith.constant 0 : i32
    %c0_i32_1 = arith.constant 0 : i32
    return %c0_i32, %c0_i32_0 : i32, i32
  }
  func.func @transform_9(%arg0: i32) -> (i32, i32) {
    %c0_i32 = arith.constant 0 : i32
    %c0_i32_0 = arith.constant 0 : i32
    %c0_i32_1 = arith.constant 0 : i32
    return %c0_i32, %c0_i32_0 : i32, i32
  }
  func.func @transform_10(%arg0: i32) -> (i32, i32) {
    %c0_i32 = arith.constant 0 : i32
    %c0_i32_0 = arith.constant 0 : i32
    %c0_i32_1 = arith.constant 0 : i32
    return %c0_i32, %c0_i32_0 : i32, i32
  }
  func.func @transform_11(%arg0: i32) -> (i32, i32) {
    %c0_i32 = arith.constant 0 : i32
    %c0_i32_0 = arith.constant 0 : i32
    %c0_i32_1 = arith.constant 0 : i32
    return %c0_i32, %c0_i32_0 : i32, i32
  }
  func.func @transform_12(%arg0: i32) -> (i32, i32) {
    %c0_i32 = arith.constant 0 : i32
    %c0_i32_0 = arith.constant 0 : i32
    %c0_i32_1 = arith.constant 0 : i32
    return %c0_i32, %c0_i32_0 : i32, i32
  }
  func.func @transform_13(%arg0: i32) -> (i32, i32) {
    %c0_i32 = arith.constant 0 : i32
    %c0_i32_0 = arith.constant 0 : i32
    %c0_i32_1 = arith.constant 0 : i32
    return %c0_i32, %c0_i32_0 : i32, i32
  }
  func.func @transform_14(%arg0: i32) -> (i32, i32) {
    %c0_i32 = arith.constant 0 : i32
    %c0_i32_0 = arith.constant 0 : i32
    %c0_i32_1 = arith.constant 0 : i32
    return %c0_i32, %c0_i32_0 : i32, i32
  }
  func.func @transform_15(%arg0: i32) -> (i32, i32) {
    %c0_i32 = arith.constant 0 : i32
    %c0_i32_0 = arith.constant 0 : i32
    %c0_i32_1 = arith.constant 0 : i32
    return %c0_i32, %c0_i32_0 : i32, i32
  }
  func.func @transform_16(%arg0: i32) -> (i32, i32) {
    %c0_i32 = arith.constant 0 : i32
    %c0_i32_0 = arith.constant 0 : i32
    %c0_i32_1 = arith.constant 0 : i32
    return %c0_i32, %c0_i32_0 : i32, i32
  }
  func.func @transform_17(%arg0: i32) -> (i32, i32) {
    %c0_i32 = arith.constant 0 : i32
    %c0_i32_0 = arith.constant 0 : i32
    %c0_i32_1 = arith.constant 0 : i32
    return %c0_i32, %c0_i32_0 : i32, i32
  }
  func.func @transform_18(%arg0: i32) -> (i32, i32) {
    %c0_i32 = arith.constant 0 : i32
    %c0_i32_0 = arith.constant 0 : i32
    %c0_i32_1 = arith.constant 0 : i32
    return %c0_i32, %c0_i32_0 : i32, i32
  }
  func.func @transform_19(%arg0: i32) -> (i32, i32) {
    %c0_i32 = arith.constant 0 : i32
    %c0_i32_0 = arith.constant 0 : i32
    return %arg0, %c0_i32 : i32, i32
  }
  func.func @transform_20(%arg0: i32) -> (i32, i32) {
    %c0_i32 = arith.constant 0 : i32
    %c0_i32_0 = arith.constant 0 : i32
    return %arg0, %c0_i32 : i32, i32
  }
  func.func @transform_21(%arg0: i32) -> (i32, i32) {
    %c0_i32 = arith.constant 0 : i32
    %c0_i32_0 = arith.constant 0 : i32
    return %arg0, %c0_i32 : i32, i32
  }
  func.func @transform_22(%arg0: i32) -> (i32, i32) {
    %c0_i32 = arith.constant 0 : i32
    %c0_i32_0 = arith.constant 0 : i32
    return %arg0, %c0_i32 : i32, i32
  }
  func.func @transform_23(%arg0: i32) -> (i32, i32) {
    %c0_i32 = arith.constant 0 : i32
    %c0_i32_0 = arith.constant 0 : i32
    return %arg0, %c0_i32 : i32, i32
  }
}

</mosaic_0001>

<bundles_post_ra>
// kernel: tpu_custom_call.1
= control target key start
LH: loop header
LB: loop body
LE: loop exit
PB: predicated region body
PF: predicated region fallthrough
CT: control target
= control target key end

     0   :  { %s2147_s0 = inlined_call_operand.hbm [shape: f32[8,16], index: 0, kind: input, shape index: {}]   ;;  %s2148_s1 = inlined_call_operand.vmem [shape: f32[8,4], index: 1, kind: input, shape index: {}]   ;;  %s2149_s2 = inlined_call_operand.hbm [shape: f32[8,16], index: 2, kind: input, shape index: {}]   ;;  %s2150_s3 = inlined_call_operand.hbm [shape: f32[16,32], index: 3, kind: input, shape index: {}]   ;;  %s2151_s4 = inlined_call_operand.hbm [shape: f32[4,32], index: 4, kind: input, shape index: {}]   ;;  %s2152_s5 = inlined_call_operand.hbm [shape: f32[1,32], index: 5, kind: input, shape index: {}]   ;;  %s2153_s6 = inlined_call_operand.vmem [shape: f32[32,32], index: 6, kind: input, shape index: {}]   ;;  %s2154_s7 = inlined_call_operand.hbm [shape: f32[1,32], index: 7, kind: input, shape index: {}]   ;;  %s2155_s8 = inlined_call_operand.hbm [shape: f32[32,32], index: 8, kind: input, shape index: {}]   ;;  %s2156_s9 = inlined_call_operand.hbm [shape: f32[1,32], index: 9, kind: input, shape index: {}]   ;;  %s2157_s10 = inlined_call_operand.hbm [shape: f32[32,32], index: 10, kind: input, shape index: {}]   ;;  %s2158_s11 = inlined_call_operand.hbm [shape: f32[16,32], index: 11, kind: input, shape index: {}]   ;;  %s2159_s12 = inlined_call_operand.hbm [shape: f32[1,32], index: 12, kind: input, shape index: {}]   ;;  %s2160_s13 = inlined_call_operand.hbm [shape: f32[32,32], index: 13, kind: input, shape index: {}]   ;;  %s2161_s14 = inlined_call_operand.hbm [shape: f32[1,32], index: 14, kind: input, shape index: {}]   ;;  %s2162_s15 = inlined_call_operand.vmem [shape: f32[32,32], index: 15, kind: input, shape index: {}]   ;;  %s2163_s16 = inlined_call_operand.vmem [shape: f32[1,32], index: 16, kind: input, shape index: {}]   ;;  %s2164_s17 = inlined_call_operand.vmem [shape: f32[1,16], index: 17, kind: input, shape index: {}]   ;;  %s2165_s18 = inlined_call_operand.vmem [shape: f32[1,16], index: 18, kind: input, shape index: {}]   ;;  %s2166_s19 = inlined_call_operand.hbm [shape: f32[8,16], index: 19, kind: output, shape index: {0}]   ;;  %s2167_s20 = inlined_call_operand.hbm [shape: f32[8,16], index: 20, kind: output, shape index: {1}]   ;;  %s2168_s21 = inlined_call_operand.hbm [shape: f32[8,16], index: 21, kind: output, shape index: {2}]   ;;  %s2169_s22 = inlined_call_operand.hbm [shape: f32[8,16], index: 22, kind: output, shape index: {3}]   ;;  %s2170_s23 = inlined_call_operand.hbm [shape: f32[8,16], index: 23, kind: output, shape index: {4}]  }
   0x1   :  { %2179 = sst [smem:[#allocation40_spill]] %s2147_s0 }
   0x2   :  { %2180 = sst [smem:[#allocation41_spill]] %s2148_s1 }
   0x3   :  { %2181 = sst [smem:[#allocation42_spill]] %s2149_s2 }
   0x4   :  { %2182 = sst [smem:[#allocation43_spill]] %s2150_s3 }
   0x5   :  { %2183 = sst [smem:[#allocation44_spill]] %s2151_s4 }
   0x6   :  { %2184 = sst [smem:[#allocation45_spill]] %s2152_s5 }
   0x7   :  { %2185 = sst [smem:[#allocation46_spill]] %s2153_s6 }
   0x8   :  { %2186 = sst [smem:[#allocation47_spill]] %s2154_s7 }
   0x9   :  { %2187 = sst [smem:[#allocation48_spill]] %s2170_s23 }
   0xa   :  { %29 = vsyncpa [#allocation3], 0 }
   0xb   :  { %30 = vsyncpa [#allocation6], 0 }
   0xc   :  { %31 = vsyncpa [#allocation9], 0 }
   0xd   :  { %32 = vsyncpa [#allocation12], 0 }
   0xe   :  { %33 = vsyncpa [#allocation15], 0 }
   0xf   :  { %34 = vsyncpa [#allocation18], 0 }
  0x10   :  { %35 = vsyncpa [#allocation21], 0 }
  0x11   :  { %36 = vsyncpa [#allocation4], 0 }
  0x12   :  { %37 = vsyncpa [#allocation25], 0 }
  0x13   :  { %38 = vsyncpa [#allocation28], 0  ;;  %s1647_s4 = smov [#allocation5]   ;;  %s1648_s24 = smov [#allocation8]  }
  0x14   :  { %s57_s30 = sshll.u32 %s1647_s4, 4  ;;  %s79_s25 = sshll.u32 %s1648_s24, 4  ;;  %s58_s30 = int_to_ptr.vmem [resolvable:$true] %s57_s30  ;;  %s80_s25 = int_to_ptr.vmem [resolvable:$true] %s79_s25 }
  0x15   :  { %s2188_s26 = sld [smem:[#allocation42_spill]] }
  0x1b   :  { %s1231_s2 = scalar_lea.hbm %s2188_s26, 128 }
  0x1c   :  { %p1232_p0 = scmp.ne.s32.totalorder %s2188_s26, %s1231_s2  ;;  %p1235_p1 = scmp.lt.u32.totalorder %s1231_s2, %s2188_s26 }
  0x1e   :  { %p1237_p2 = pnand %p1235_p1, %p1232_p0 }
  0x20   :  { %1240 = shalt.err (!%p1237_p2)
}
  0x21   :  { %s1241_s29 = scalar_lea.vmem %s58_s30, 128  ;;  %p1246_p4 = scmp.lt.s32.totalorder %s58_s30, %s58_s30 }
  0x22   :  { %p1242_p3 = scmp.ne.s32.totalorder %s58_s30, %s1241_s29  ;;  %p1247_p5 = scmp.lt.s32.totalorder %s1241_s29, %s1241_s29 }
  0x24   :  { %p1248_p6 = por %p1247_p5, %p1246_p4 }
  0x26   :  { %p1249_p7 = pnand %p1248_p6, %p1242_p3 }
  0x28   :  { %1252 = shalt.err (!%p1249_p7)
}
  0x29   :  { %60 = dma.hbm_to_vmem [thread:$0]  %s2188_s26, 128, %s58_s30, [#allocation6]  }
  0x2a   :  { %s2189_s5 = sld [smem:[#allocation44_spill]] }
  0x30   :  { %s1253_s1 = scalar_lea.hbm %s2189_s5, 64 }
  0x31   :  { %p1254_p8 = scmp.ne.s32.totalorder %s2189_s5, %s1253_s1  ;;  %p1257_p9 = scmp.lt.u32.totalorder %s1253_s1, %s2189_s5 }
  0x33   :  { %p1259_p10 = pnand %p1257_p9, %p1254_p8 }
  0x35   :  { %1262 = shalt.err (!%p1259_p10)
}
  0x36   :  { %s1263_s28 = scalar_lea.vmem %s80_s25, 64  ;;  %p1268_p12 = scmp.lt.s32.totalorder %s80_s25, %s80_s25 }
  0x37   :  { %p1264_p11 = scmp.ne.s32.totalorder %s80_s25, %s1263_s28  ;;  %p1269_p13 = scmp.lt.s32.totalorder %s1263_s28, %s1263_s28 }
  0x39   :  { %p1270_p0 = por %p1269_p13, %p1268_p12 }
  0x3b   :  { %p1271_p1 = pnand %p1270_p0, %p1264_p11 }
  0x3d   :  { %1274 = shalt.err (!%p1271_p1)
}
  0x3e   :  { %82 = dma.hbm_to_vmem [thread:$0]  %s2189_s5, 64, %s80_s25, [#allocation9]  }
  0x3f   :  { %s1649_s29 = smov [#allocation11]   ;;  %s1650_s0 = smov [#allocation14]  }
  0x40   :  { %s101_s3 = sshll.u32 %s1649_s29, 4  ;;  %s123_s4 = sshll.u32 %s1650_s0, 4  ;;  %s102_s3 = int_to_ptr.vmem [resolvable:$true] %s101_s3  ;;  %s124_s4 = int_to_ptr.vmem [resolvable:$true] %s123_s4 }
  0x41   :  { %s2190_s6 = sld [smem:[#allocation47_spill]] }
  0x47   :  { %s1275_s27 = scalar_lea.hbm %s2190_s6, 16 }
  0x48   :  { %p1276_p2 = scmp.ne.s32.totalorder %s2190_s6, %s1275_s27  ;;  %p1279_p3 = scmp.lt.u32.totalorder %s1275_s27, %s2190_s6 }
  0x4a   :  { %p1281_p4 = pnand %p1279_p3, %p1276_p2 }
  0x4c   :  { %1284 = shalt.err (!%p1281_p4)
}
  0x4d   :  { %s1285_s25 = scalar_lea.vmem %s102_s3, 16  ;;  %s1289_s5 = scalar_lea.vmem %s102_s3, 32 }
  0x4e   :  { %p1286_p5 = scmp.ne.s32.totalorder %s102_s3, %s1285_s25  ;;  %p1290_p6 = scmp.lt.s32.totalorder %s102_s3, %s102_s3 }
  0x4f   :  { %p1291_p7 = scmp.lt.s32.totalorder %s1289_s5, %s1285_s25 }
  0x51   :  { %p1292_p8 = por %p1291_p7, %p1290_p6 }
  0x53   :  { %p1293_p9 = pnand %p1292_p8, %p1286_p5 }
  0x55   :  { %1296 = shalt.err (!%p1293_p9)
}
  0x56   :  { %104 = dma.hbm_to_vmem [thread:$0]  %s2190_s6, 16, %s102_s3, [#allocation12]  }
  0x57   :  { %s1297_s24 = scalar_lea.hbm %s2156_s9, 16 }
  0x58   :  { %p1298_p10 = scmp.ne.s32.totalorder %s2156_s9, %s1297_s24  ;;  %p1301_p11 = scmp.lt.u32.totalorder %s1297_s24, %s2156_s9 }
  0x5a   :  { %p1303_p12 = pnand %p1301_p11, %p1298_p10 }
  0x5c   :  { %1306 = shalt.err (!%p1303_p12)
}
  0x5d   :  { %s1307_s7 = scalar_lea.vmem %s124_s4, 16  ;;  %s1311_s28 = scalar_lea.vmem %s124_s4, 32 }
  0x5e   :  { %p1308_p13 = scmp.ne.s32.totalorder %s124_s4, %s1307_s7  ;;  %p1312_p0 = scmp.lt.s32.totalorder %s124_s4, %s124_s4 }
  0x5f   :  { %p1313_p1 = scmp.lt.s32.totalorder %s1311_s28, %s1307_s7 }
  0x61   :  { %p1314_p2 = por %p1313_p1, %p1312_p0 }
  0x63   :  { %p1315_p3 = pnand %p1314_p2, %p1308_p13 }
  0x65   :  { %1318 = shalt.err (!%p1315_p3)
}
  0x66   :  { %126 = dma.hbm_to_vmem [thread:$0]  %s2156_s9, 16, %s124_s4, [#allocation15]  }
  0x67   :  { %s1651_s25 = smov [#allocation17]   ;;  %s1652_s30 = smov [#allocation20]  }
  0x68   :  { %s144_s5 = sshll.u32 %s1651_s25, 4  ;;  %s166_s26 = sshll.u32 %s1652_s30, 4  ;;  %s145_s5 = int_to_ptr.vmem [resolvable:$true] %s144_s5  ;;  %s1839_s26 = int_to_ptr.vmem [resolvable:$true] %s166_s26 }
  0x69   :  { %s1319_s24 = scalar_lea.hbm %s2158_s11, 256 }
  0x6a   :  { %p1320_p4 = scmp.ne.s32.totalorder %s2158_s11, %s1319_s24  ;;  %p1323_p5 = scmp.lt.u32.totalorder %s1319_s24, %s2158_s11 }
  0x6c   :  { %p1325_p6 = pnand %p1323_p5, %p1320_p4 }
  0x6e   :  { %1328 = shalt.err (!%p1325_p6)
}
  0x6f   :  { %s1329_s9 = scalar_lea.vmem %s145_s5, 256  ;;  %p1334_p8 = scmp.lt.s32.totalorder %s145_s5, %s145_s5 }
  0x70   :  { %p1330_p7 = scmp.ne.s32.totalorder %s145_s5, %s1329_s9  ;;  %p1335_p9 = scmp.lt.s32.totalorder %s1329_s9, %s1329_s9 }
  0x72   :  { %p1336_p10 = por %p1335_p9, %p1334_p8 }
  0x74   :  { %p1337_p11 = pnand %p1336_p10, %p1330_p7 }
  0x76   :  { %1340 = shalt.err (!%p1337_p11)
}
  0x77   :  { %s1653_s4 = smov 128   ;;  %s1654_s7 = smov 8  }
  0x78   :  { %150 = dma.hbm_to_vmem [thread:$0]  %s2158_s11, 256, %s145_s5, [#allocation18], %s1653_s4, %s1653_s4, %s1654_s7  }
  0x79   :  { %s1341_s30 = scalar_lea.hbm %s2160_s13, 512 }
  0x7a   :  { %p1342_p12 = scmp.ne.s32.totalorder %s2160_s13, %s1341_s30  ;;  %p1345_p13 = scmp.lt.u32.totalorder %s1341_s30, %s2160_s13 }
  0x7c   :  { %p1347_p0 = pnand %p1345_p13, %p1342_p12 }
  0x7e   :  { %1350 = shalt.err (!%p1347_p0)
}
  0x7f   :  { %s1351_s1 = scalar_lea.vmem %s1839_s26, 512  ;;  %p1356_p2 = scmp.lt.s32.totalorder %s1839_s26, %s1839_s26 }
  0x80   :  { %p1352_p1 = scmp.ne.s32.totalorder %s1839_s26, %s1351_s1  ;;  %p1357_p3 = scmp.lt.s32.totalorder %s1351_s1, %s1351_s1 }
  0x82   :  { %p1358_p4 = por %p1357_p3, %p1356_p2 }
  0x84   :  { %p1359_p5 = pnand %p1358_p4, %p1352_p1 }
  0x86   :  { %1362 = shalt.err (!%p1359_p5)
}
  0x87   :  { %172 = dma.hbm_to_vmem [thread:$0]  %s2160_s13, 512, %s1839_s26, [#allocation21], %s1653_s4, %s1653_s4, %s1654_s7  }
  0x88   :  { %s1655_s27 = smov [#allocation2]   ;;  %s1656_s9 = smov [#allocation7]  }
  0x89   :  { %s45_s2 = sshll.u32 %s1655_s27, 4  ;;  %s66_s28 = sshll.u32 %s1656_s9, 4  ;;  %s46_s2 = int_to_ptr.vmem [resolvable:$true] %s45_s2  ;;  %s1876_s28 = int_to_ptr.vmem [resolvable:$true] %s66_s28 }
  0x8a   :  { %s2191_s25 = sld [smem:[#allocation40_spill]] }
  0x90   :  { %s1363_s30 = scalar_lea.hbm %s2191_s25, 128 }
  0x91   :  { %p1364_p6 = scmp.ne.s32.totalorder %s2191_s25, %s1363_s30  ;;  %p1367_p7 = scmp.lt.u32.totalorder %s1363_s30, %s2191_s25 }
  0x93   :  { %p1369_p8 = pnand %p1367_p7, %p1364_p6 }
  0x95   :  { %1372 = shalt.err (!%p1369_p8)
}
  0x96   :  { %s1373_s13 = scalar_lea.vmem %s46_s2, 128  ;;  %p1378_p10 = scmp.lt.s32.totalorder %s46_s2, %s46_s2 }
  0x97   :  { %p1374_p9 = scmp.ne.s32.totalorder %s46_s2, %s1373_s13  ;;  %p1379_p11 = scmp.lt.s32.totalorder %s1373_s13, %s1373_s13 }
  0x99   :  { %p1380_p12 = por %p1379_p11, %p1378_p10 }
  0x9b   :  { %p1381_p13 = pnand %p1380_p12, %p1374_p9 }
  0x9d   :  { %1384 = shalt.err (!%p1381_p13)
}
  0x9e   :  { %48 = dma.hbm_to_vmem [thread:$0]  %s2191_s25, 128, %s46_s2, [#allocation3]  }
  0x9f   :  { %s2192_s27 = sld [smem:[#allocation43_spill]] }
  0xa5   :  { %s1385_s9 = scalar_lea.hbm %s2192_s27, 256 }
  0xa6   :  { %p1386_p0 = scmp.ne.s32.totalorder %s2192_s27, %s1385_s9  ;;  %p1389_p1 = scmp.lt.u32.totalorder %s1385_s9, %s2192_s27 }
  0xa8   :  { %p1391_p2 = pnand %p1389_p1, %p1386_p0 }
  0xaa   :  { %1394 = shalt.err (!%p1391_p2)
}
  0xab   :  { %s1395_s0 = scalar_lea.vmem %s1876_s28, 256  ;;  %p1400_p4 = scmp.lt.s32.totalorder %s1876_s28, %s1876_s28 }
  0xac   :  { %p1396_p3 = scmp.ne.s32.totalorder %s1876_s28, %s1395_s0  ;;  %p1401_p5 = scmp.lt.s32.totalorder %s1395_s0, %s1395_s0 }
  0xae   :  { %p1402_p6 = por %p1401_p5, %p1400_p4 }
  0xb0   :  { %p1403_p7 = pnand %p1402_p6, %p1396_p3 }
  0xb2   :  { %1406 = shalt.err (!%p1403_p7)
}
  0xb3   :  { %72 = dma.hbm_to_vmem [thread:$0]  %s2192_s27, 256, %s1876_s28, [#allocation6], %s1653_s4, %s1653_s4, %s1654_s7  }
  0xb4   :  { %s1657_s24 = smov [#allocation10]   ;;  %s1658_s13 = smov [#allocation13]  }
  0xb5   :  { %s89_s23 = sshll.u32 %s1657_s24, 4  ;;  %s110_s26 = sshll.u32 %s1658_s13, 4  ;;  %s90_s23 = int_to_ptr.vmem [resolvable:$true] %s89_s23  ;;  %s1910_s26 = int_to_ptr.vmem [resolvable:$true] %s110_s26 }
  0xb6   :  { %s2193_s5 = sld [smem:[#allocation45_spill]] }
  0xbc   :  { %s1407_s9 = scalar_lea.hbm %s2193_s5, 16 }
  0xbd   :  { %p1408_p8 = scmp.ne.s32.totalorder %s2193_s5, %s1407_s9  ;;  %p1411_p9 = scmp.lt.u32.totalorder %s1407_s9, %s2193_s5 }
  0xbf   :  { %p1413_p10 = pnand %p1411_p9, %p1408_p8 }
  0xc1   :  { %1416 = shalt.err (!%p1413_p10)
}
  0xc2   :  { %s1417_s28 = scalar_lea.vmem %s90_s23, 16  ;;  %s1421_s27 = scalar_lea.vmem %s90_s23, 32 }
  0xc3   :  { %p1418_p11 = scmp.ne.s32.totalorder %s90_s23, %s1417_s28  ;;  %p1422_p12 = scmp.lt.s32.totalorder %s90_s23, %s90_s23 }
  0xc4   :  { %p1423_p13 = scmp.lt.s32.totalorder %s1421_s27, %s1417_s28 }
  0xc6   :  { %p1424_p0 = por %p1423_p13, %p1422_p12 }
  0xc8   :  { %p1425_p1 = pnand %p1424_p0, %p1418_p11 }
  0xca   :  { %1428 = shalt.err (!%p1425_p1)
}
  0xcb   :  { %92 = dma.hbm_to_vmem [thread:$0]  %s2193_s5, 16, %s90_s23, [#allocation9]  }
  0xcc   :  { %s1429_s13 = scalar_lea.hbm %s2155_s8, 512 }
  0xcd   :  { %p1430_p2 = scmp.ne.s32.totalorder %s2155_s8, %s1429_s13  ;;  %p1433_p3 = scmp.lt.u32.totalorder %s1429_s13, %s2155_s8 }
  0xcf   :  { %p1435_p4 = pnand %p1433_p3, %p1430_p2 }
  0xd1   :  { %1438 = shalt.err (!%p1435_p4)
}
  0xd2   :  { %s1439_s6 = scalar_lea.vmem %s1910_s26, 512  ;;  %p1444_p6 = scmp.lt.s32.totalorder %s1910_s26, %s1910_s26 }
  0xd3   :  { %p1440_p5 = scmp.ne.s32.totalorder %s1910_s26, %s1439_s6  ;;  %p1445_p7 = scmp.lt.s32.totalorder %s1439_s6, %s1439_s6 }
  0xd5   :  { %p1446_p8 = por %p1445_p7, %p1444_p6 }
  0xd7   :  { %p1447_p9 = pnand %p1446_p8, %p1440_p5 }
  0xd9   :  { %1450 = shalt.err (!%p1447_p9)
}
  0xda   :  { %116 = dma.hbm_to_vmem [thread:$0]  %s2155_s8, 512, %s1910_s26, [#allocation12], %s1653_s4, %s1653_s4, %s1654_s7  }
  0xdb   :  { %s1659_s30 = smov [#allocation16]   ;;  %s1660_s28 = smov [#allocation19]  }
  0xdc   :  { %s132_s29 = sshll.u32 %s1659_s30, 4  ;;  %s157_s27 = sshll.u32 %s1660_s28, 4  ;;  %s133_s29 = int_to_ptr.vmem [resolvable:$true] %s132_s29  ;;  %s158_s27 = int_to_ptr.vmem [resolvable:$true] %s157_s27 }
  0xdd   :  { %s1451_s25 = scalar_lea.hbm %s2157_s10, 512 }
  0xde   :  { %p1452_p10 = scmp.ne.s32.totalorder %s2157_s10, %s1451_s25  ;;  %p1455_p11 = scmp.lt.u32.totalorder %s1451_s25, %s2157_s10 }
  0xe0   :  { %p1457_p12 = pnand %p1455_p11, %p1452_p10 }
  0xe2   :  { %1460 = shalt.err (!%p1457_p12)
}
  0xe3   :  { %s1461_s8 = scalar_lea.vmem %s133_s29, 512  ;;  %p1466_p0 = scmp.lt.s32.totalorder %s133_s29, %s133_s29 }
  0xe4   :  { %p1462_p13 = scmp.ne.s32.totalorder %s133_s29, %s1461_s8  ;;  %p1467_p1 = scmp.lt.s32.totalorder %s1461_s8, %s1461_s8 }
  0xe6   :  { %p1468_p2 = por %p1467_p1, %p1466_p0 }
  0xe8   :  { %p1469_p3 = pnand %p1468_p2, %p1462_p13 }
  0xea   :  { %1472 = shalt.err (!%p1469_p3)
}
  0xeb   :  { %138 = dma.hbm_to_vmem [thread:$0]  %s2157_s10, 512, %s133_s29, [#allocation15], %s1653_s4, %s1653_s4, %s1654_s7  }
  0xec   :  { %s1473_s23 = scalar_lea.hbm %s2159_s12, 16 }
  0xed   :  { %p1474_p4 = scmp.ne.s32.totalorder %s2159_s12, %s1473_s23  ;;  %p1477_p5 = scmp.lt.u32.totalorder %s1473_s23, %s2159_s12 }
  0xef   :  { %p1479_p6 = pnand %p1477_p5, %p1474_p4 }
  0xf1   :  { %1482 = shalt.err (!%p1479_p6)
}
  0xf2   :  { %s1483_s2 = scalar_lea.vmem %s158_s27, 16  ;;  %s1487_s25 = scalar_lea.vmem %s158_s27, 32 }
  0xf3   :  { %p1484_p7 = scmp.ne.s32.totalorder %s158_s27, %s1483_s2  ;;  %p1488_p8 = scmp.lt.s32.totalorder %s158_s27, %s158_s27 }
  0xf4   :  { %p1489_p9 = scmp.lt.s32.totalorder %s1487_s25, %s1483_s2 }
  0xf6   :  { %p1490_p10 = por %p1489_p9, %p1488_p8 }
  0xf8   :  { %p1491_p11 = pnand %p1490_p10, %p1484_p7 }
  0xfa   :  { %1494 = shalt.err (!%p1491_p11)
}
  0xfb   :  { %160 = dma.hbm_to_vmem [thread:$0]  %s2159_s12, 16, %s158_s27, [#allocation18]  }
  0xfc   :  { %s1661_s7 = smov [#allocation22]   ;;  %s1495_s1 = scalar_lea.hbm %s2161_s14, 16 }
  0xfd   :  { %s179_s29 = sshll.u32 %s1661_s7, 4  ;;  %p1496_p12 = scmp.ne.s32.totalorder %s2161_s14, %s1495_s1  ;;  %s180_s29 = int_to_ptr.vmem [resolvable:$true] %s179_s29 }
  0xfe   :  { %p1499_p13 = scmp.lt.u32.totalorder %s1495_s1, %s2161_s14 }
 0x100   :  { %p1501_p0 = pnand %p1499_p13, %p1496_p12 }
 0x102   :  { %1504 = shalt.err (!%p1501_p0)
}
 0x103   :  { %s1505_s3 = scalar_lea.vmem %s180_s29, 16  ;;  %s1509_s12 = scalar_lea.vmem %s180_s29, 32 }
 0x104   :  { %p1506_p1 = scmp.ne.s32.totalorder %s180_s29, %s1505_s3  ;;  %p1510_p2 = scmp.lt.s32.totalorder %s180_s29, %s180_s29 }
 0x105   :  { %p1511_p3 = scmp.lt.s32.totalorder %s1509_s12, %s1505_s3 }
 0x107   :  { %p1512_p4 = por %p1511_p3, %p1510_p2 }
 0x109   :  { %p1513_p5 = pnand %p1512_p4, %p1506_p1 }
 0x10b   :  { %1516 = shalt.err (!%p1513_p5)
}
 0x10c   :  { %182 = dma.hbm_to_vmem [thread:$0]  %s2161_s14, 16, %s180_s29, [#allocation21]  }
 0x10d   :  { %1627 = dma.done.wait [#allocation3], 128  }
 0x10e   :  { %1628 = vsyncadd [#allocation3], 4294967168 }
 0x10f   :  { %1629 = dma.done.wait [#allocation6], 384  }
 0x110   :  { %1630 = vsyncadd [#allocation6], 4294966912 }
 0x111   :  { %1631 = dma.done.wait [#allocation9], 80  }
 0x112   :  { %1632 = vsyncadd [#allocation9], 4294967216 }
 0x113   :  { %1633 = dma.done.wait [#allocation12], 528  }
 0x114   :  { %1634 = vsyncadd [#allocation12], 4294966768 }
 0x115   :  { %1635 = dma.done.wait [#allocation15], 528  }
 0x116   :  { %1636 = vsyncadd [#allocation15], 4294966768 }
 0x117   :  { %1637 = dma.done.wait [#allocation18], 272  }
 0x118   :  { %1638 = vsyncadd [#allocation18], 4294967024 }
 0x119   :  { %1639 = dma.done.wait [#allocation21], 528  }
 0x11a   :  { %1640 = vsyncadd [#allocation21], 4294966768  ;;  %v1662_v0 = vmov 0.0   ;;  %vm1663_vm0 = vmmov 0   ;;  %v1664_v1 = vmov 0.0|0.0   ;;  %vm259_vm1 = vcmask 1043456  }
 0x11b   :  { %1087 = vmatprep.subr.mxu0 %v1662_v0  ;;  %1089 = vmatprep.mubr.msk.f32.mxu0 %vm1663_vm0, %v1662_v0  ;;  %vm255_vm2 = vcmask 31744   ;;  %v254_v2 = vld [vmem:[#allocation8] sm:$0xf]  ;;  %s2194_s5 = sld [smem:[#allocation41_spill]]  ;;  %v252_v4 = vld [vmem:[#allocation7] sm:$0xff]  ;;  %v253_v5 = vld [vmem:[#allocation7 + $0x8] sm:$0xff] }
 0x11c   :  { %1170 = vmatprep.subr.bf16.mxu1 %v1664_v1  ;;  %1118 = vmatprep.mubr.msk.f32.mxu1 %vm1663_vm0, %v1662_v0  ;;  %v1162_v6 = vpack.c.bf16 %v253_v5, %v252_v4  ;;  %v230_v7 = vld [vmem:[#allocation2] sm:$0xff]  ;;  %vm250_vm3 = vcmask 130048   ;;  %s2195_s0 = sld [smem:[#allocation46_spill]]  ;;  %v501_v14 = vld [vmem:[#allocation13] sm:$0xff]  ;;  %v502_v15 = vld [vmem:[#allocation13 + $0x8] sm:$0xff]  ;;  %vm426_vm4 = vcmask 261120  }
 0x11d   :  { %1088 = vmatpush3.msk.msra.mxu0 %vm259_vm1, %v254_v2  ;;  %v1171_v16 = vpack.c.bf16 %v502_v15, %v501_v14  ;;  %v1042_v20 = vld [vmem:[#allocation10] ss:$0 sm:$0xff]  ;;  %v503_v25 = vld [vmem:[#allocation13 + $0x10] sm:$0xff]  ;;  %v614_v28 = vld [vmem:[#allocation17] sm:$0xff]  ;;  %s1665_s8 = smov 112   ;;  %s1667_s28 = smov [#allocation27]  }
 0x11e   :  { %1161 = vmatprep.subr.bf16.mxu0 %v1664_v1  ;;  %v504_v26 = vld [vmem:[#allocation13 + $0x18] sm:$0xff]  ;;  %v615_v29 = vld [vmem:[#allocation17 + $0x8] sm:$0xff]  ;;  %v2018_v31 = vld [vmem:[#allocation5] sm:$0xff] }
 0x11f   :  { %1172 = vmatpush3.bf16.msra.mxu1 %v1171_v16  ;;  %v1174_v27 = vpack.c.bf16 %v504_v26, %v503_v25  ;;  %v1177_v30 = vpack.c.bf16 %v615_v29, %v614_v28  ;;  %v1043_v32 = vld [vmem:[#allocation11] ss:$0 sm:$0xff]  ;;  %v610_v33 = vld [vmem:[#allocation16] sm:$0xff]  ;;  %v611_v34 = vld [vmem:[#allocation16 + $0x8] sm:$0xff] }
 0x120   :  { %1173 = vmatprep.subr.bf16.mxu1 %v1664_v1  ;;  %v1180_v38 = vpack.c.bf16 %v611_v34, %v610_v33  ;;  %v612_v40 = vld [vmem:[#allocation16 + $0x10] sm:$0xff]  ;;  %v613_v41 = vld [vmem:[#allocation16 + $0x18] sm:$0xff]  ;;  %v770_v48 = vld [vmem:[#allocation20 + $0x10] sm:$0xff] }
 0x121   :  { %v231_v3 = vld [vmem:[%s2194_s5] sm:$0xff]  ;;  %v1183_v42 = vpack.c.bf16 %v613_v41, %v612_v40  ;;  %v771_v49 = vld [vmem:[#allocation20 + $0x18] sm:$0xff]  ;;  %v1045_v51 = vld [vmem:[#allocation14] ss:$0 sm:$0xff]  ;;  %s1666_s5 = smov [#allocation24]  }
 0x122   :  { %1090 = vmatmul.mubr.msk.f32.vlgmr.msra.gmra.mrb[0].mxu0 %vm255_vm2, %v231_v3  ;;  %v415_v8 = vld [vmem:[%s2195_s0] sm:$0xff]  ;;  %v416_v9 = vld [vmem:[%s2195_s0 + $0x8] sm:$0xff]  ;;  %v417_v11 = vld [vmem:[%s2195_s0 + $0x10] sm:$0xff]  ;;  %v1189_v50 = vpack.c.bf16 %v771_v49, %v770_v48  ;;  %s978_s30 = sshll.u32 %s1666_s5, 4  ;;  %s979_s30 = int_to_ptr.vmem [resolvable:$true] %s978_s30 }
 0x123   :  { %1096 = vmatprep.mubr.msk.f32.mxu0 %vm1663_vm0, %v1662_v0  ;;  %1163 = vmatpush3.bf16.msra.mxu0 %v1162_v6  ;;  %v1165_v10 = vpack.c.bf16 %v416_v9, %v415_v8  ;;  %v418_v12 = vld [vmem:[%s2195_s0 + $0x18] sm:$0xff]  ;;  %v769_v44 = vld [vmem:[#allocation20 + $0x8] sm:$0xff]  ;;  %v1052_v25 = vld [vmem:[%s2163_s16] ss:$0 sm:$0xff]  ;;  %s998_s0 = sshll.u32 %s1667_s28, 4  ;;  %p1522_p7 = scmp.lt.s32.totalorder %s979_s30, %s979_s30  ;;  %s999_s0 = int_to_ptr.vmem [resolvable:$true] %s998_s0 }
 0x124   :  { %1164 = vmatprep.subr.bf16.mxu0 %v1664_v1  ;;  %v1168_v13 = vpack.c.bf16 %v418_v12, %v417_v11  ;;  %1175 = vmatpush3.bf16.msra.mxu1 %v1174_v27  ;;  %v768_v43 = vld [vmem:[#allocation20] sm:$0xff]  ;;  %v1049_v59 = vld [vmem:[#allocation19] ss:$0 sm:$0xff]  ;;  %v854_v5 = vld [vmem:[%s2162_s15 + $0x8] sm:$0xff] }
 0x125   :  { %1179 = vmatprep.subr.bf16.mxu1 %v1664_v1  ;;  %v1186_v45 = vpack.c.bf16 %v769_v44, %v768_v43  ;;  %v853_v4 = vld [vmem:[%s2162_s15] sm:$0xff] }
 0x126   :  { %1097 = vmatmul.mubr.msk.f32.vlgmr.msra.gmra.mrb[2].mxu0 %vm250_vm3, %v230_v7  ;;  %v1192_v7 = vpack.c.bf16 %v854_v5, %v853_v4  ;;  %v1038_v33 = vld [vmem:[%s2165_s18] ss:$0 sm:$0xff]  ;;  %s1517_s18 = scalar_lea.vmem %s979_s30, 128 }
 0x127   :  { %1107 = vmatprep.mubr.msk.f32.mxu0 %vm1663_vm0, %v1662_v0  ;;  %1166 = vmatpush3.bf16.msra.mxu0 %v1165_v10  ;;  %p1518_p6 = scmp.ne.s32.totalorder %s979_s30, %s1517_s18  ;;  %p1523_p8 = scmp.lt.s32.totalorder %s1517_s18, %s1517_s18 }
 0x128   :  { %1167 = vmatprep.subr.bf16.mxu0 %v1664_v1 }
 0x129   :  { %p1524_p9 = por %p1523_p8, %p1522_p7 }
 0x12b   :  { %1169 = vmatpush3.bf16.msra.mxu0 %v1168_v13  ;;  %p1525_p10 = pnand %p1524_p9, %p1518_p6 }
 0x12c   :  { %1176 = vmatprep.subr.bf16.mxu0 %v1664_v1 }
 0x1f5   :  { %v329_v17 = vpop.f32.mrb[0].mxu0 }
 0x1f6   :  { %v1091_v18 = vpop.f32.mrb[1].mxu0 }
 0x1f9   :  { %v402_v19 = vpop.f32.mrb[2].mxu0 }
 0x1fa   :  { %v403_v21 = vadd.f32 %v402_v19, %v329_v17  ;;  %v1098_v22 = vpop.f32.mrb[3].mxu0  ;;  %v855_v17 = vld [vmem:[%s2162_s15 + $0x10] sm:$0xff] }
 0x1fc   :  { %v413_v23 = vadd.f32 %v1042_v20, %v403_v21  ;;  %v1050_v20 = vld [vmem:[#allocation22] ss:$0 sm:$0xff] }
 0x1fe   :  { %v414_v24 = vmax.f32 %v413_v23, 0.0 }
 0x200   :  { %1108 = vmatmul.mubr.msk.f32.vlgmr.msra.gmra.mrb[4].mxu0 %vm426_vm4, %v414_v24 }
 0x201   :  { %1125 = vmatprep.mubr.msk.f32.mxu0 %vm1663_vm0, %v1662_v0  ;;  %1178 = vmatpush3.bf16.msra.mxu0 %v1177_v30 }
 0x202   :  { %1185 = vmatprep.subr.bf16.mxu0 %v1664_v1 }
 0x204   :  { %1126 = vmatmul.mubr.msk.f32.vlgmr.msra.gmra.mrb[6].mxu0 %vm250_vm3, %v2018_v31 }
 0x205   :  { %1147 = vmatprep.mubr.msk.f32.mxu0 %vm1663_vm0, %v1662_v0  ;;  %1187 = vmatpush3.bf16.msra.mxu0 %v1186_v45 }
 0x206   :  { %1188 = vmatprep.subr.bf16.mxu0 %v1664_v1 }
 0x209   :  { %1190 = vmatpush3.bf16.msra.mxu0 %v1189_v50 }
 0x2d3   :  { %v496_v35 = vpop.f32.mrb[4].mxu0 }
 0x2d4   :  { %v497_v36 = vadd.f32 %v1043_v32, %v496_v35  ;;  %v1109_v37 = vpop.f32.mrb[5].mxu0  ;;  %v1037_v35 = vld [vmem:[%s2164_s17] ss:$0 sm:$0xff] }
 0x2d5   :  { %v240_v37 = vsub.f32 %v2018_v31, %v1037_v35 }
 0x2d6   :  { %v500_v39 = vmax.f32 %v497_v36, 0.0 }
 0x2d7   :  { %v685_v46 = vpop.f32.mrb[6].mxu0 }
 0x2d8   :  { %1119 = vmatmul.mubr.msk.f32.vlgmr.msra.gmra.mrb[0].mxu1 %vm426_vm4, %v500_v39  ;;  %v1127_v47 = vpop.f32.mrb[7].mxu0 }
 0x2d9   :  { %1181 = vmatpush3.bf16.msra.mxu1 %v1180_v38  ;;  %1136 = vmatprep.mubr.msk.f32.mxu1 %vm1663_vm0, %v1662_v0 }
 0x2da   :  { %1182 = vmatprep.subr.bf16.mxu1 %v1664_v1 }
 0x2dd   :  { %1184 = vmatpush3.bf16.msra.mxu1 %v1183_v42 }
 0x2de   :  { %1191 = vmatprep.subr.bf16.mxu1 %v1664_v1 }
 0x2e0   :  { %1137 = vmatmul.mubr.msk.f32.vlgmr.msra.gmra.mrb[2].mxu1 %vm426_vm4, %v500_v39 }
 0x2e1   :  { %1158 = vmatprep.mubr.msk.f32.mxu1 %vm1663_vm0, %v1662_v0  ;;  %1193 = vmatpush3.bf16.msra.mxu1 %v1192_v7 }
 0x2e2   :  { %1194 = vmatprep.subr.bf16.mxu1 %v1664_v1  ;;  %v856_v1 = vld [vmem:[%s2162_s15 + $0x18] sm:$0xff] }
 0x2e3   :  { %v1195_v18 = vpack.c.bf16 %v856_v1, %v855_v17 }
 0x2e5   :  { %1196 = vmatpush3.bf16.msra.mxu1 %v1195_v18 }
 0x3ab   :  { %v581_v52 = vpop.f32.mrb[0].mxu1 }
 0x3ac   :  { %v582_v53 = vadd.f32 %v1045_v51, %v581_v52  ;;  %v1120_v54 = vpop.f32.mrb[1].mxu1 }
 0x3ae   :  { %v589_v55 = vand.u32 2147483647, %v582_v53  ;;  %585 = vst.msk [vmem:[#allocation24] sm:$0xff] %vm250_vm3, %v582_v53  ;;  %v586_v12 = vmax.f32 %v582_v53, 0.0  ;;  %vm587_vm6 = vcmp.ne.f32.partialorder %v582_v53, %v582_v53 }
 0x3b0   :  { %v590_v56 = vsub.f32 0.0, %v589_v55 }
 0x3b2   :  { %v591_v57 = vmul.f32 1.442695, %v590_v56 }
 0x3b3   :  { %v755_v58 = vpop.f32.mrb[2].mxu1 }
 0x3b4   :  { %1221 = vpow2.f32 %v591_v57  ;;  %v756_v60 = vadd.f32 %v755_v58, %v685_v46  ;;  %v1138_v61 = vpop.f32.mrb[3].mxu1 }
 0x3b6   :  { %v766_v62 = vadd.f32 %v1049_v59, %v756_v60 }
 0x3b8   :  { %v767_v63 = vmax.f32 %v766_v62, 0.0 }
 0x3ba   :  { %1148 = vmatmul.mubr.msk.f32.vlgmr.msra.gmra.mrb[8].mxu0 %vm426_vm4, %v767_v63 }
 0x3be   :  { %v1222_v0 = vpop.eup %1221 }
 0x3bf   :  { %v593_v2 = vadd.f32 1.0, %v1222_v0  ;;  %v596_v3 = vmul.f32 -0.5, %v1222_v0  ;;  %v599_v8 = vand.u32 2147483647, %v1222_v0 }
 0x3c1   :  { %1223 = vlog2.f32 %v593_v2  ;;  %v597_v6 = vadd.f32 1.0, %v596_v3  ;;  %vm600_vm5 = vcmp.lt.f32.partialorder %v599_v8, 0.0004427343 }
 0x3c3   :  { %v598_v11 = vmul.f32 %v1222_v0, %v597_v6 }
 0x3cb   :  { %v1224_v9 = vpop.eup %1223 }
 0x3cc   :  { %v595_v10 = vmul.f32 0.6931472, %v1224_v9 }
 0x3ce   :  { %v601_v13 = vsel %vm600_vm5, %v598_v11, %v595_v10 }
 0x3cf   :  { %v602_v14 = vadd.f32 %v601_v13, %v586_v12 }
 0x3d1   :  { %v603_v15 = vsel %vm587_vm6, %v582_v53, %v602_v14 }
 0x3d2   :  { %v604_v16 = vadd.f32 0.0001, %v603_v15 }
 0x3d4   :  { %606 = vrot.lane.b32.xlu0 %v604_v16, %s1665_s8 }
 0x446   :  { %v607_v19 = vpop.permute.xlu0 %606 }
 0x447   :  { %609 = vst.msk [vmem:[#allocation26] sm:$0xff] %vm250_vm3, %v607_v19 }
 0x48d   :  { %v848_v21 = vpop.f32.mrb[8].mxu0 }
 0x48e   :  { %v849_v22 = vadd.f32 %v1050_v20, %v848_v21  ;;  %v1149_v23 = vpop.f32.mrb[9].mxu0 }
 0x490   :  { %v852_v24 = vmax.f32 %v849_v22, 0.0 }
 0x492   :  { %1159 = vmatmul.mubr.msk.f32.vlgmr.msra.gmra.mrb[4].mxu1 %vm426_vm4, %v852_v24 }
 0x565   :  { %v933_v26 = vpop.f32.mrb[4].mxu1 }
 0x566   :  { %v2055_v27 = vadd.f32 %v1052_v25, %v933_v26  ;;  %v1160_v28 = vpop.f32.mrb[5].mxu1 }
 0x568   :  { %v941_v29 = vand.u32 2147483647, %v2055_v27  ;;  %937 = vst.msk [vmem:[#allocation27] sm:$0xff] %vm250_vm3, %v2055_v27 }
 0x56a   :  { %v942_v30 = vsub.f32 0.0, %v941_v29 }
 0x56c   :  { %v943_v32 = vmul.f32 1.442695, %v942_v30 }
 0x56e   :  { %1225 = vpow2.f32 %v943_v32 }
 0x56f   :  { %1227 = vrcp.f32 %v1038_v33 }
 0x578   :  { %v2063_v34 = vpop.eup %1225 }
 0x579   :  { %v945_v36 = vadd.f32 1.0, %v2063_v34  ;;  %v1228_v38 = vpop.eup %1227  ;;  %v948_v39 = vmul.f32 -0.5, %v2063_v34 }
 0x57a   :  { %v249_v40 = vmul.f32 %v1228_v38, %v240_v37 }
 0x57b   :  { %1229 = vlog2.f32 %v945_v36 }
 0x57c   :  { %1528 = shalt.err (!%p1525_p10)
}
 0x57d   :  { %s1529_s25 = scalar_lea.hbm %s2167_s20, 128 }
 0x57e   :  { %p1530_p11 = scmp.ne.s32.totalorder %s2167_s20, %s1529_s25  ;;  %p1533_p12 = scmp.lt.u32.totalorder %s1529_s25, %s2167_s20 }
 0x580   :  { %p1535_p13 = pnand %p1533_p12, %p1530_p11 }
 0x582   :  { %1538 = shalt.err (!%p1535_p13)
}
 0x583   :  { %981 = dma.vmem_to_hbm [thread:$0]  %s979_s30, 128, %s2167_s20, [#allocation25]   ;;  %251 = vst.msk [vmem:[#allocation23] sm:$0xff] %vm250_vm3, %v249_v40  ;;  %v949_v31 = vadd.f32 1.0, %v948_v39 }
 0x584   :  { %s1539_s1 = scalar_lea.vmem %s999_s0, 128  ;;  %p1544_p1 = scmp.lt.s32.totalorder %s999_s0, %s999_s0 }
 0x585   :  { %p1540_p0 = scmp.ne.s32.totalorder %s999_s0, %s1539_s1  ;;  %p1545_p2 = scmp.lt.s32.totalorder %s1539_s1, %s1539_s1 }
 0x587   :  { %p1546_p3 = por %p1545_p2, %p1544_p1 }
 0x589   :  { %p1547_p4 = pnand %p1546_p3, %p1540_p0 }
 0x58b   :  { %1550 = shalt.err (!%p1547_p4)
}
 0x58c   :  { %s1551_s9 = scalar_lea.hbm %s2169_s22, 128 }
 0x58d   :  { %p1552_p5 = scmp.ne.s32.totalorder %s2169_s22, %s1551_s9  ;;  %p1555_p6 = scmp.lt.u32.totalorder %s1551_s9, %s2169_s22 }
 0x58f   :  { %p1557_p7 = pnand %p1555_p6, %p1552_p5 }
 0x591   :  { %1560 = shalt.err (!%p1557_p7)
}
 0x592   :  { %1001 = dma.vmem_to_hbm [thread:$0]  %s999_s0, 128, %s2169_s22, [#allocation28]   ;;  %v951_v41 = vand.u32 2147483647, %v2063_v34  ;;  %v1230_v42 = vpop.eup %1229  ;;  %v950_v44 = vmul.f32 %v2063_v34, %v949_v31 }
 0x593   :  { %s1668_s14 = smov [#allocation23]   ;;  %s1669_s23 = smov [#allocation26]   ;;  %v947_v43 = vmul.f32 0.6931472, %v1230_v42 }
 0x594   :  { %s968_s16 = sshll.u32 %s1668_s14, 4  ;;  %s988_s5 = sshll.u32 %s1669_s23, 4  ;;  %s969_s16 = int_to_ptr.vmem [resolvable:$true] %s968_s16  ;;  %s2097_s5 = int_to_ptr.vmem [resolvable:$true] %s988_s5 }
 0x595   :  { %s1561_s30 = scalar_lea.vmem %s969_s16, 128  ;;  %p1566_p9 = scmp.lt.s32.totalorder %s969_s16, %s969_s16 }
 0x596   :  { %p1562_p8 = scmp.ne.s32.totalorder %s969_s16, %s1561_s30  ;;  %p1567_p10 = scmp.lt.s32.totalorder %s1561_s30, %s1561_s30 }
 0x598   :  { %p1568_p11 = por %p1567_p10, %p1566_p9 }
 0x59a   :  { %p1569_p12 = pnand %p1568_p11, %p1562_p8 }
 0x59c   :  { %1572 = shalt.err (!%p1569_p12)
}
 0x59d   :  { %s1573_s0 = scalar_lea.hbm %s2166_s19, 128 }
 0x59e   :  { %p1574_p13 = scmp.ne.s32.totalorder %s2166_s19, %s1573_s0  ;;  %p1577_p0 = scmp.lt.u32.totalorder %s1573_s0, %s2166_s19 }
 0x5a0   :  { %p1579_p1 = pnand %p1577_p0, %p1574_p13 }
 0x5a2   :  { %1582 = shalt.err (!%p1579_p1)
}
 0x5a3   :  { %971 = dma.vmem_to_hbm [thread:$0]  %s969_s16, 128, %s2166_s19, [#allocation4]   ;;  %v938_v45 = vmax.f32 %v2055_v27, 0.0  ;;  %vm952_vm7 = vcmp.lt.f32.partialorder %v951_v41, 0.0004427343 }
 0x5a4   :  { %s1583_s7 = scalar_lea.vmem %s2097_s5, 128  ;;  %p1588_p3 = scmp.lt.s32.totalorder %s2097_s5, %s2097_s5 }
 0x5a5   :  { %p1584_p2 = scmp.ne.s32.totalorder %s2097_s5, %s1583_s7  ;;  %p1589_p4 = scmp.lt.s32.totalorder %s1583_s7, %s1583_s7 }
 0x5a7   :  { %p1590_p5 = por %p1589_p4, %p1588_p3 }
 0x5a9   :  { %p1591_p6 = pnand %p1590_p5, %p1584_p2 }
 0x5ab   :  { %1594 = shalt.err (!%p1591_p6)
}
 0x5ac   :  { %s1595_s13 = scalar_lea.hbm %s2168_s21, 128 }
 0x5ad   :  { %p1596_p7 = scmp.ne.s32.totalorder %s2168_s21, %s1595_s13  ;;  %p1599_p8 = scmp.lt.u32.totalorder %s1595_s13, %s2168_s21 }
 0x5af   :  { %p1601_p9 = pnand %p1599_p8, %p1596_p7 }
 0x5b1   :  { %1604 = shalt.err (!%p1601_p9)
}
 0x5b2   :  { %991 = dma.vmem_to_hbm [thread:$0]  %s2097_s5, 128, %s2168_s21, [#allocation25]   ;;  %v953_v46 = vsel %vm952_vm7, %v950_v44, %v947_v43  ;;  %vm939_vm8 = vcmp.ne.f32.partialorder %v2055_v27, %v2055_v27 }
 0x5b3   :  { %v954_v47 = vadd.f32 %v953_v46, %v938_v45  ;;  %s1670_s12 = smov [#allocation29]  }
 0x5b4   :  { %s1008_s27 = sshll.u32 %s1670_s12, 4  ;;  %s1009_s27 = int_to_ptr.vmem [resolvable:$true] %s1008_s27 }
 0x5b5   :  { %v955_v48 = vsel %vm939_vm8, %v2055_v27, %v954_v47  ;;  %s1605_s20 = scalar_lea.vmem %s1009_s27, 128  ;;  %p1610_p11 = scmp.lt.s32.totalorder %s1009_s27, %s1009_s27 }
 0x5b6   :  { %v956_v49 = vadd.f32 0.0001, %v955_v48  ;;  %p1606_p10 = scmp.ne.s32.totalorder %s1009_s27, %s1605_s20  ;;  %p1611_p12 = scmp.lt.s32.totalorder %s1605_s20, %s1605_s20 }
 0x5b8   :  { %958 = vrot.lane.b32.xlu0 %v956_v49, %s1665_s8  ;;  %p1612_p13 = por %p1611_p12, %p1610_p11 }
 0x5ba   :  { %p1613_p0 = pnand %p1612_p13, %p1606_p10 }
 0x62a   :  { %v959_v50 = vpop.permute.xlu0 %958 }
 0x62b   :  { %961 = vst.msk [vmem:[#allocation29] sm:$0xff] %vm250_vm3, %v959_v50 }
 0x62c   :  { %1616 = shalt.err (!%p1613_p0)
}
 0x62d   :  { %s2196_s15 = sld [smem:[#allocation48_spill]] }
 0x633   :  { %s1617_s14 = scalar_lea.hbm %s2196_s15, 128 }
 0x634   :  { %p1618_p1 = scmp.ne.s32.totalorder %s2196_s15, %s1617_s14  ;;  %p1621_p2 = scmp.lt.u32.totalorder %s1617_s14, %s2196_s15 }
 0x636   :  { %p1623_p3 = pnand %p1621_p2, %p1618_p1 }
 0x638   :  { %1626 = shalt.err (!%p1623_p3)
}
 0x639   :  { %1011 = dma.vmem_to_hbm [thread:$0]  %s1009_s27, 128, %s2196_s15, [#allocation28]  }
 0x63a   :  { %1641 = dma.done.wait [#allocation4], 128  }
 0x63b   :  { %1642 = vsyncadd [#allocation4], 4294967168 }
 0x63c   :  { %1643 = dma.done.wait [#allocation25], 256  }
 0x63d   :  { %1644 = vsyncadd [#allocation25], 4294967040 }
 0x63e   :  { %1645 = dma.done.wait [#allocation28], 256  }
 0x63f   :  { %1646 = vsyncadd [#allocation28], 4294967040 }
 0x640   :  { %1027 = vsyncpa [#allocation3], 1 }
 0x641   :  { %1028 = vsyncpa [#allocation6], 1 }
 0x642   :  { %1029 = vsyncpa [#allocation9], 1 }
 0x643   :  { %1030 = vsyncpa [#allocation12], 1 }
 0x644   :  { %1031 = vsyncpa [#allocation15], 1 }
 0x645   :  { %1032 = vsyncpa [#allocation18], 1 }
 0x646   :  { %1033 = vsyncpa [#allocation21], 1 }
 0x647   :  { %1034 = vsyncpa [#allocation4], 1 }
 0x648   :  { %1035 = vsyncpa [#allocation25], 1 }
 0x649   :  { %1036 = vsyncpa [#allocation28], 1 }

</bundles_post_ra>
